<compile_context>
chip_gen: v7x
topology: tpu7x:2x2x1
jax: 0.10.0
libtpu: 0.0.40
codegen_flags: <defaults>
</compile_context>

<pallas_src>
import functools

import jax
import jax.numpy as jnp
from jax.experimental import pallas as pl
from jax.experimental.pallas import tpu as pltpu


def _round_up(n, m):
    return ((n + m - 1) // m) * m


def _vmem_capacity_bytes():
    """Best-effort per-core VMEM capacity; conservative 64 MiB (v7x) fallback."""
    try:
        return int(pltpu.get_tpu_info().vmem_capacity_bytes)
    except Exception:
        return 64 << 20


def _token_mixing_mlp_kernel(x_ref, gamma_ref, beta_ref, w1_ref, b1_ref,
                             w2_ref, b2_ref, o_ref, *, eps):
    """One (row_tile, D) block: LayerNorm -> fc1 -> GELU(erf) -> fc2.

    Rows are independent, so a masked partial final block is safe (garbage in
    the out-of-bounds rows never mixes into valid rows and is never stored).
    LayerNorm / bias / GELU stay in f32 (v5e has no bf16 VPU/EUP); the two
    dots use bf16 operands with f32 MXU accumulation.
    """
    x = x_ref[...].astype(jnp.float32)                          # (TR, D)
    inv_d = jnp.float32(1.0 / x.shape[-1])
    mu = jnp.sum(x, axis=-1, keepdims=True) * inv_d
    xc = x - mu
    var = jnp.sum(xc * xc, axis=-1, keepdims=True) * inv_d
    xn = xc * jax.lax.rsqrt(var + jnp.float32(eps)) * gamma_ref[...] + beta_ref[...]

    h = jnp.dot(xn.astype(jnp.bfloat16), w1_ref[...],
                preferred_element_type=jnp.float32) + b1_ref[...]
    # Exact (erf) GELU -- matches PyTorch nn.GELU() default numerics.
    h = 0.5 * h * (1.0 + jax.lax.erf(h * jnp.float32(0.7071067811865476)))
    y = jnp.dot(h.astype(jnp.bfloat16), w2_ref[...],
                preferred_element_type=jnp.float32) + b2_ref[...]
    o_ref[...] = y.astype(o_ref.dtype)


def _pick_row_tile(rows, D, H, x_itemsize, out_itemsize, requested,
                   work_budget, single_buffer_invariants):
    """Largest row tile (multiple of 8) whose VMEM working set fits the budget."""
    inv_buf = 1 if single_buffer_invariants else 2
    # Grid-invariant residents: two bf16 weights + f32 gamma/beta/b1/b2 rows.
    fixed = inv_buf * (2 * D * H * 2 + 4 * (3 * D + H))
    # Per-row bytes: streamed x / out tiles are double-buffered by the
    # pipeline; in-step intermediates are xn / h / y in f32 plus bf16 casts.
    per_row = (2 * D * x_itemsize + 2 * D * out_itemsize     # x, out (2 buffers each)
               + 4 * D + 2 * D                               # xn f32 + bf16 cast
               + 4 * H + 2 * H                               # h  f32 + bf16 cast
               + 4 * D)                                      # y  f32
    avail = max(work_budget - fixed, 8 * per_row)
    tile = max(8, min(requested, avail // per_row) // 8 * 8)

    # Never exceed the array; keep >= 2 grid steps when rows > 8 so the
    # "parallel" axis can shard across v7x's two TensorCores.
    if rows <= 8:
        tile = rows                      # full extent (allowed by (8,128) rule)
    else:
        tile = min(tile, _round_up(pl.cdiv(rows, 2), 8))
    return int(tile)


def _build_call(rows, D, H, out_dtype, row_tile, vmem_limit, eps,
                single_buffer_invariants):
    grid = (pl.cdiv(rows, row_tile),)
    row_map = lambda i: (i, 0)
    const_map = lambda i: (0, 0)

    def inv_spec(shape):
        # Grid-invariant operand: constant block index -> fetched once; with
        # Buffered(1) it is also single-buffered (halves its VMEM residency).
        if single_buffer_invariants:
            return pl.BlockSpec(shape, const_map, pipeline_mode=pl.Buffered(1))
        return pl.BlockSpec(shape, const_map)

    kernel = functools.partial(_token_mixing_mlp_kernel, eps=eps)
    return pl.pallas_call(
        kernel,
        out_shape=jax.ShapeDtypeStruct((rows, D), out_dtype),
        grid_spec=pltpu.PrefetchScalarGridSpec(
            num_scalar_prefetch=0,
            grid=grid,
            in_specs=[
                pl.BlockSpec((row_tile, D), row_map),   # x rows (streamed)
                inv_spec((1, D)),                       # LN gamma
                inv_spec((1, D)),                       # LN beta
                inv_spec((D, H)),                       # fc1 weight (bf16)
                inv_spec((1, H)),                       # fc1 bias
                inv_spec((H, D)),                       # fc2 weight (bf16)
                inv_spec((1, D)),                       # fc2 bias
            ],
            out_specs=pl.BlockSpec((row_tile, D), row_map),
        ),
        compiler_params=pltpu.CompilerParams(
            dimension_semantics=("parallel",),          # row tiles shard across TCs
            vmem_limit_bytes=vmem_limit,
        ),
    )


def token_mixing_mlp(x, gamma, beta, w1, b1, w2, b2, *, eps=1e-5,
                     row_tile=2048):
    """x: (B, S, D) -> (B, S, D) with PyTorch TokenMixingMLP forward semantics.

    w1: (D, H) = fc1.weight.T, b1: (H,), w2: (H, D) = fc2.weight.T, b2: (D,).
    """
    B, S, D = x.shape
    H = w1.shape[1]
    rows = B * S

    f32 = jnp.float32
    x2 = x.reshape(rows, D)
    gamma2 = gamma.astype(f32).reshape(1, D)
    beta2 = beta.astype(f32).reshape(1, D)
    b1_2 = b1.astype(f32).reshape(1, H)
    b2_2 = b2.astype(f32).reshape(1, D)
    # Weights stored / DMA'd as bf16 (MXU-native operand dtype, halves DMA and
    # VMEM residency); accumulation stays f32.
    w1b = w1.astype(jnp.bfloat16)
    w2b = w2.astype(jnp.bfloat16)

    # Generation-aware VMEM budget (v5e/v6e: 128 MiB per core, v7x: 64 MiB).
    vmem_cap = _vmem_capacity_bytes()
    if vmem_cap >= (96 << 20):
        work_budget, vmem_limit = 64 << 20, 96 << 20
    else:
        work_budget, vmem_limit = 24 << 20, 48 << 20

    itemsize = jnp.dtype(x.dtype).itemsize
    args = (x2, gamma2, beta2, w1b, b1_2, w2b, b2_2)

    # Prefer single-buffered grid-invariant operands (pl.Buffered(1)); fall
    # back to default double-buffering if this JAX build rejects it.
    out = None
    for single_buf in (True, False):
        tile = _pick_row_tile(rows, D, H, itemsize, itemsize, row_tile,
                              work_budget, single_buf)
        try:
            out = _build_call(rows, D, H, x.dtype, tile, vmem_limit, eps,
                              single_buf)(*args)
            break
        except Exception:
            if not single_buf:
                raise
    return out.reshape(B, S, D)


def reference(x, gamma, beta, w1, b1, w2, b2, eps=1e-5):
    xf = x.astype(jnp.float32)
    mu = jnp.mean(xf, axis=-1, keepdims=True)
    var = jnp.mean((xf - mu) ** 2, axis=-1, keepdims=True)
    xn = (xf - mu) * jax.lax.rsqrt(var + eps) * gamma + beta
    h = xn @ w1 + b1
    h = 0.5 * h * (1.0 + jax.lax.erf(h / jnp.sqrt(2.0)))
    return (h @ w2 + b2).astype(x.dtype)


if __name__ == "__main__":
    # Module hyperparams (small, consistent with the forward semantics).
    B, S, dim, tokens_mlp_dim = 2, 8, 32, 64

    key = jax.random.PRNGKey(0)
    kx, k1, k2, k3, k4, k5, k6, kx2 = jax.random.split(key, 8)

    x = jax.random.normal(kx, (B, S, dim), dtype=jnp.float32)

    gamma = jnp.ones((dim,), jnp.float32) + 0.1 * jax.random.normal(k1, (dim,))
    beta = 0.1 * jax.random.normal(k2, (dim,))
    # fc1: PyTorch weight is (tokens_mlp_dim, dim); stored transposed (dim, H).
    w1 = (jax.random.normal(k3, (dim, tokens_mlp_dim)) / jnp.sqrt(dim)).astype(jnp.float32)
    b1 = 0.1 * jax.random.normal(k4, (tokens_mlp_dim,)).astype(jnp.float32)
    # fc2: PyTorch weight is (dim, tokens_mlp_dim); stored transposed (H, dim).
    w2 = (jax.random.normal(k5, (tokens_mlp_dim, dim)) / jnp.sqrt(tokens_mlp_dim)).astype(jnp.float32)
    b2 = 0.1 * jax.random.normal(k6, (dim,)).astype(jnp.float32)

    ref = reference(x, gamma, beta, w1, b1, w2, b2)
    out = jax.block_until_ready(token_mixing_mlp(x, gamma, beta, w1, b1, w2, b2))
    assert out.shape == (B, S, dim)
    # bf16 MXU operands loosen the tolerance vs. the pure-f32 reference.
    assert jnp.allclose(out, ref, atol=5e-2, rtol=5e-2), "mismatch vs reference"

    # "Variable sequence lengths": rows not a multiple of 8 / of the tile —
    # exercises the masked partial-final-block path (no padding anywhere).
    S2 = 13
    x_odd = jax.random.normal(kx2, (B, S2, dim), dtype=jnp.float32)
    ref_odd = reference(x_odd, gamma, beta, w1, b1, w2, b2)
    out_odd = jax.block_until_ready(
        token_mixing_mlp(x_odd, gamma, beta, w1, b1, w2, b2))
    assert out_odd.shape == (B, S2, dim)
    assert jnp.allclose(out_odd, ref_odd, atol=5e-2, rtol=5e-2), "mismatch (ragged) vs reference"

    print("KERNEL_OK")
</pallas_src>

<mosaic_0001>
module attributes {stable_mosaic.version = 11 : i64} {
  func.func @_token_mixing_mlp_kernel(%arg0: i32, %arg1: memref<8x32xf32, #tpu.memory_space<vmem>>, %arg2: memref<1x32xf32, #tpu.memory_space<vmem>>, %arg3: memref<1x32xf32, #tpu.memory_space<vmem>>, %arg4: memref<32x64xbf16, #tpu.memory_space<vmem>>, %arg5: memref<1x64xf32, #tpu.memory_space<vmem>>, %arg6: memref<64x32xbf16, #tpu.memory_space<vmem>>, %arg7: memref<1x32xf32, #tpu.memory_space<vmem>>, %arg8: memref<8x32xf32, #tpu.memory_space<vmem>>) attributes {dimension_semantics = [#tpu.dimension_semantics<parallel>], iteration_bounds = array<i64: 2>, scalar_prefetch = 0 : i64, scratch_operands = 0 : i64, tpu.core_type = #tpu.core_type<tc>, window_params = [{transform_indices = @transform_0, window_bounds = array<i64: 8, 32>}, {pipeline_mode = #tpu.pipeline_mode<synchronous>, transform_indices = @transform_1, window_bounds = array<i64: 1, 32>}, {pipeline_mode = #tpu.pipeline_mode<synchronous>, transform_indices = @transform_2, window_bounds = array<i64: 1, 32>}, {pipeline_mode = #tpu.pipeline_mode<synchronous>, transform_indices = @transform_3, window_bounds = array<i64: 32, 64>}, {pipeline_mode = #tpu.pipeline_mode<synchronous>, transform_indices = @transform_4, window_bounds = array<i64: 1, 64>}, {pipeline_mode = #tpu.pipeline_mode<synchronous>, transform_indices = @transform_5, window_bounds = array<i64: 64, 32>}, {pipeline_mode = #tpu.pipeline_mode<synchronous>, transform_indices = @transform_6, window_bounds = array<i64: 1, 32>}, {transform_indices = @transform_7, window_bounds = array<i64: 8, 32>}]} {
    %c0 = arith.constant 0 : index
    %c0_0 = arith.constant 0 : index
    %0 = vector.load %arg1[%c0, %c0_0] : memref<8x32xf32, #tpu.memory_space<vmem>>, vector<8x32xf32>
    %cst = arith.constant dense<0.000000e+00> : vector<8xf32>
    %1 = vector.multi_reduction <add>, %0, %cst [1] : vector<8x32xf32> to vector<8xf32>
    %2 = vector.shape_cast %1 : vector<8xf32> to vector<8x1xf32>
    %cst_1 = arith.constant 3.125000e-02 : f32
    %3 = vector.broadcast %cst_1 : f32 to vector<8x1xf32>
    %4 = arith.mulf %2, %3 : vector<8x1xf32>
    %5 = vector.broadcast %4 : vector<8x1xf32> to vector<8x32xf32>
    %6 = arith.subf %0, %5 : vector<8x32xf32>
    %7 = arith.mulf %6, %6 : vector<8x32xf32>
    %cst_2 = arith.constant dense<0.000000e+00> : vector<8xf32>
    %8 = vector.multi_reduction <add>, %7, %cst_2 [1] : vector<8x32xf32> to vector<8xf32>
    %9 = vector.shape_cast %8 : vector<8xf32> to vector<8x1xf32>
    %cst_3 = arith.constant 3.125000e-02 : f32
    %10 = vector.broadcast %cst_3 : f32 to vector<8x1xf32>
    %11 = arith.mulf %9, %10 : vector<8x1xf32>
    %cst_4 = arith.constant 9.99999974E-6 : f32
    %12 = vector.broadcast %cst_4 : f32 to vector<8x1xf32>
    %13 = arith.addf %11, %12 : vector<8x1xf32>
    %14 = math.rsqrt %13 : vector<8x1xf32>
    %15 = vector.broadcast %14 : vector<8x1xf32> to vector<8x32xf32>
    %16 = arith.mulf %6, %15 : vector<8x32xf32>
    %c0_5 = arith.constant 0 : index
    %c0_6 = arith.constant 0 : index
    %17 = vector.load %arg2[%c0_5, %c0_6] : memref<1x32xf32, #tpu.memory_space<vmem>>, vector<1x32xf32>
    %18 = vector.broadcast %17 : vector<1x32xf32> to vector<8x32xf32>
    %19 = arith.mulf %16, %18 : vector<8x32xf32>
    %c0_7 = arith.constant 0 : index
    %c0_8 = arith.constant 0 : index
    %20 = vector.load %arg3[%c0_7, %c0_8] : memref<1x32xf32, #tpu.memory_space<vmem>>, vector<1x32xf32>
    %21 = vector.broadcast %20 : vector<1x32xf32> to vector<8x32xf32>
    %22 = arith.addf %19, %21 : vector<8x32xf32>
    %23 = arith.truncf %22 : vector<8x32xf32> to vector<8x32xbf16>
    %c0_9 = arith.constant 0 : index
    %c0_10 = arith.constant 0 : index
    %24 = vector.load %arg4[%c0_9, %c0_10] : memref<32x64xbf16, #tpu.memory_space<vmem>>, vector<32x64xbf16>
    %cst_11 = arith.constant dense<0.000000e+00> : vector<8x64xf32>
    %25 = tpu.matmul %23, %24, %cst_11 {dimension_numbers = #tpu.dot_dimension_numbers<[1], [0], [0], [1], [0, 0, 1, 1], [], []>} : vector<8x32xbf16>, vector<32x64xbf16>, vector<8x64xf32> -> vector<8x64xf32>
    %c0_12 = arith.constant 0 : index
    %c0_13 = arith.constant 0 : index
    %26 = vector.load %arg5[%c0_12, %c0_13] : memref<1x64xf32, #tpu.memory_space<vmem>>, vector<1x64xf32>
    %27 = vector.broadcast %26 : vector<1x64xf32> to vector<8x64xf32>
    %28 = arith.addf %25, %27 : vector<8x64xf32>
    %cst_14 = arith.constant 5.000000e-01 : f32
    %29 = vector.broadcast %cst_14 : f32 to vector<8x64xf32>
    %30 = arith.mulf %29, %28 : vector<8x64xf32>
    %cst_15 = arith.constant 0.707106769 : f32
    %31 = vector.broadcast %cst_15 : f32 to vector<8x64xf32>
    %32 = arith.mulf %28, %31 : vector<8x64xf32>
    %33 = math.erf %32 : vector<8x64xf32>
    %cst_16 = arith.constant 1.000000e+00 : f32
    %34 = vector.broadcast %cst_16 : f32 to vector<8x64xf32>
    %35 = arith.addf %34, %33 : vector<8x64xf32>
    %36 = arith.mulf %30, %35 : vector<8x64xf32>
    %37 = arith.truncf %36 : vector<8x64xf32> to vector<8x64xbf16>
    %c0_17 = arith.constant 0 : index
    %c0_18 = arith.constant 0 : index
    %38 = vector.load %arg6[%c0_17, %c0_18] : memref<64x32xbf16, #tpu.memory_space<vmem>>, vector<64x32xbf16>
    %cst_19 = arith.constant dense<0.000000e+00> : vector<8x32xf32>
    %39 = tpu.matmul %37, %38, %cst_19 {dimension_numbers = #tpu.dot_dimension_numbers<[1], [0], [0], [1], [0, 0, 1, 1], [], []>} : vector<8x64xbf16>, vector<64x32xbf16>, vector<8x32xf32> -> vector<8x32xf32>
    %c0_20 = arith.constant 0 : index
    %c0_21 = arith.constant 0 : index
    %40 = vector.load %arg7[%c0_20, %c0_21] : memref<1x32xf32, #tpu.memory_space<vmem>>, vector<1x32xf32>
    %41 = vector.broadcast %40 : vector<1x32xf32> to vector<8x32xf32>
    %42 = arith.addf %39, %41 : vector<8x32xf32>
    %c0_22 = arith.constant 0 : index
    %c0_23 = arith.constant 0 : index
    %43 = vector.load %arg8[%c0_22, %c0_23] : memref<8x32xf32, #tpu.memory_space<vmem>>, vector<8x32xf32>
    tpu.vector_store %arg8[%c0_22, %c0_23], %42 {strides = array<i32>} : memref<8x32xf32, #tpu.memory_space<vmem>>, vector<8x32xf32>,
    return
  }
  func.func @transform_0(%arg0: i32) -> (i32, i32) {
    %c0_i32 = arith.constant 0 : i32
    %c0_i32_0 = arith.constant 0 : i32
    return %arg0, %c0_i32 : i32, i32
  }
  func.func @transform_1(%arg0: i32) -> (i32, i32) {
    %c0_i32 = arith.constant 0 : i32
    %c0_i32_0 = arith.constant 0 : i32
    %c0_i32_1 = arith.constant 0 : i32
    return %c0_i32, %c0_i32_0 : i32, i32
  }
  func.func @transform_2(%arg0: i32) -> (i32, i32) {
    %c0_i32 = arith.constant 0 : i32
    %c0_i32_0 = arith.constant 0 : i32
    %c0_i32_1 = arith.constant 0 : i32
    return %c0_i32, %c0_i32_0 : i32, i32
  }
  func.func @transform_3(%arg0: i32) -> (i32, i32) {
    %c0_i32 = arith.constant 0 : i32
    %c0_i32_0 = arith.constant 0 : i32
    %c0_i32_1 = arith.constant 0 : i32
    return %c0_i32, %c0_i32_0 : i32, i32
  }
  func.func @transform_4(%arg0: i32) -> (i32, i32) {
    %c0_i32 = arith.constant 0 : i32
    %c0_i32_0 = arith.constant 0 : i32
    %c0_i32_1 = arith.constant 0 : i32
    return %c0_i32, %c0_i32_0 : i32, i32
  }
  func.func @transform_5(%arg0: i32) -> (i32, i32) {
    %c0_i32 = arith.constant 0 : i32
    %c0_i32_0 = arith.constant 0 : i32
    %c0_i32_1 = arith.constant 0 : i32
    return %c0_i32, %c0_i32_0 : i32, i32
  }
  func.func @transform_6(%arg0: i32) -> (i32, i32) {
    %c0_i32 = arith.constant 0 : i32
    %c0_i32_0 = arith.constant 0 : i32
    %c0_i32_1 = arith.constant 0 : i32
    return %c0_i32, %c0_i32_0 : i32, i32
  }
  func.func @transform_7(%arg0: i32) -> (i32, i32) {
    %c0_i32 = arith.constant 0 : i32
    %c0_i32_0 = arith.constant 0 : i32
    return %arg0, %c0_i32 : i32, i32
  }
}

module attributes {stable_mosaic.version = 11 : i64} {
  func.func @_token_mixing_mlp_kernel(%arg0: i32, %arg1: memref<8x32xf32, #tpu.memory_space<vmem>>, %arg2: memref<1x32xf32, #tpu.memory_space<vmem>>, %arg3: memref<1x32xf32, #tpu.memory_space<vmem>>, %arg4: memref<32x64xbf16, #tpu.memory_space<vmem>>, %arg5: memref<1x64xf32, #tpu.memory_space<vmem>>, %arg6: memref<64x32xbf16, #tpu.memory_space<vmem>>, %arg7: memref<1x32xf32, #tpu.memory_space<vmem>>, %arg8: memref<8x32xf32, #tpu.memory_space<vmem>>) attributes {dimension_semantics = [#tpu.dimension_semantics<parallel>], iteration_bounds = array<i64: 2>, scalar_prefetch = 0 : i64, scratch_operands = 0 : i64, tpu.core_type = #tpu.core_type<tc>, window_params = [{transform_indices = @transform_0, window_bounds = array<i64: 8, 32>}, {pipeline_mode = #tpu.pipeline_mode<synchronous>, transform_indices = @transform_1, window_bounds = array<i64: 1, 32>}, {pipeline_mode = #tpu.pipeline_mode<synchronous>, transform_indices = @transform_2, window_bounds = array<i64: 1, 32>}, {pipeline_mode = #tpu.pipeline_mode<synchronous>, transform_indices = @transform_3, window_bounds = array<i64: 32, 64>}, {pipeline_mode = #tpu.pipeline_mode<synchronous>, transform_indices = @transform_4, window_bounds = array<i64: 1, 64>}, {pipeline_mode = #tpu.pipeline_mode<synchronous>, transform_indices = @transform_5, window_bounds = array<i64: 64, 32>}, {pipeline_mode = #tpu.pipeline_mode<synchronous>, transform_indices = @transform_6, window_bounds = array<i64: 1, 32>}, {transform_indices = @transform_7, window_bounds = array<i64: 8, 32>}]} {
    %c0 = arith.constant 0 : index
    %c0_0 = arith.constant 0 : index
    %0 = vector.load %arg1[%c0, %c0_0] : memref<8x32xf32, #tpu.memory_space<vmem>>, vector<8x32xf32>
    %cst = arith.constant dense<0.000000e+00> : vector<8xf32>
    %1 = vector.multi_reduction <add>, %0, %cst [1] : vector<8x32xf32> to vector<8xf32>
    %2 = vector.shape_cast %1 : vector<8xf32> to vector<8x1xf32>
    %cst_1 = arith.constant 3.125000e-02 : f32
    %3 = vector.broadcast %cst_1 : f32 to vector<8x1xf32>
    %4 = arith.mulf %2, %3 : vector<8x1xf32>
    %5 = vector.broadcast %4 : vector<8x1xf32> to vector<8x32xf32>
    %6 = arith.subf %0, %5 : vector<8x32xf32>
    %7 = arith.mulf %6, %6 : vector<8x32xf32>
    %cst_2 = arith.constant dense<0.000000e+00> : vector<8xf32>
    %8 = vector.multi_reduction <add>, %7, %cst_2 [1] : vector<8x32xf32> to vector<8xf32>
    %9 = vector.shape_cast %8 : vector<8xf32> to vector<8x1xf32>
    %cst_3 = arith.constant 3.125000e-02 : f32
    %10 = vector.broadcast %cst_3 : f32 to vector<8x1xf32>
    %11 = arith.mulf %9, %10 : vector<8x1xf32>
    %cst_4 = arith.constant 9.99999974E-6 : f32
    %12 = vector.broadcast %cst_4 : f32 to vector<8x1xf32>
    %13 = arith.addf %11, %12 : vector<8x1xf32>
    %14 = math.rsqrt %13 : vector<8x1xf32>
    %15 = vector.broadcast %14 : vector<8x1xf32> to vector<8x32xf32>
    %16 = arith.mulf %6, %15 : vector<8x32xf32>
    %c0_5 = arith.constant 0 : index
    %c0_6 = arith.constant 0 : index
    %17 = vector.load %arg2[%c0_5, %c0_6] : memref<1x32xf32, #tpu.memory_space<vmem>>, vector<1x32xf32>
    %18 = vector.broadcast %17 : vector<1x32xf32> to vector<8x32xf32>
    %19 = arith.mulf %16, %18 : vector<8x32xf32>
    %c0_7 = arith.constant 0 : index
    %c0_8 = arith.constant 0 : index
    %20 = vector.load %arg3[%c0_7, %c0_8] : memref<1x32xf32, #tpu.memory_space<vmem>>, vector<1x32xf32>
    %21 = vector.broadcast %20 : vector<1x32xf32> to vector<8x32xf32>
    %22 = arith.addf %19, %21 : vector<8x32xf32>
    %23 = arith.truncf %22 : vector<8x32xf32> to vector<8x32xbf16>
    %c0_9 = arith.constant 0 : index
    %c0_10 = arith.constant 0 : index
    %24 = vector.load %arg4[%c0_9, %c0_10] : memref<32x64xbf16, #tpu.memory_space<vmem>>, vector<32x64xbf16>
    %cst_11 = arith.constant dense<0.000000e+00> : vector<8x64xf32>
    %25 = tpu.matmul %23, %24, %cst_11 {dimension_numbers = #tpu.dot_dimension_numbers<[1], [0], [0], [1], [0, 0, 1, 1], [], []>} : vector<8x32xbf16>, vector<32x64xbf16>, vector<8x64xf32> -> vector<8x64xf32>
    %c0_12 = arith.constant 0 : index
    %c0_13 = arith.constant 0 : index
    %26 = vector.load %arg5[%c0_12, %c0_13] : memref<1x64xf32, #tpu.memory_space<vmem>>, vector<1x64xf32>
    %27 = vector.broadcast %26 : vector<1x64xf32> to vector<8x64xf32>
    %28 = arith.addf %25, %27 : vector<8x64xf32>
    %cst_14 = arith.constant 5.000000e-01 : f32
    %29 = vector.broadcast %cst_14 : f32 to vector<8x64xf32>
    %30 = arith.mulf %29, %28 : vector<8x64xf32>
    %cst_15 = arith.constant 0.707106769 : f32
    %31 = vector.broadcast %cst_15 : f32 to vector<8x64xf32>
    %32 = arith.mulf %28, %31 : vector<8x64xf32>
    %33 = math.erf %32 : vector<8x64xf32>
    %cst_16 = arith.constant 1.000000e+00 : f32
    %34 = vector.broadcast %cst_16 : f32 to vector<8x64xf32>
    %35 = arith.addf %34, %33 : vector<8x64xf32>
    %36 = arith.mulf %30, %35 : vector<8x64xf32>
    %37 = arith.truncf %36 : vector<8x64xf32> to vector<8x64xbf16>
    %c0_17 = arith.constant 0 : index
    %c0_18 = arith.constant 0 : index
    %38 = vector.load %arg6[%c0_17, %c0_18] : memref<64x32xbf16, #tpu.memory_space<vmem>>, vector<64x32xbf16>
    %cst_19 = arith.constant dense<0.000000e+00> : vector<8x32xf32>
    %39 = tpu.matmul %37, %38, %cst_19 {dimension_numbers = #tpu.dot_dimension_numbers<[1], [0], [0], [1], [0, 0, 1, 1], [], []>} : vector<8x64xbf16>, vector<64x32xbf16>, vector<8x32xf32> -> vector<8x32xf32>
    %c0_20 = arith.constant 0 : index
    %c0_21 = arith.constant 0 : index
    %40 = vector.load %arg7[%c0_20, %c0_21] : memref<1x32xf32, #tpu.memory_space<vmem>>, vector<1x32xf32>
    %41 = vector.broadcast %40 : vector<1x32xf32> to vector<8x32xf32>
    %42 = arith.addf %39, %41 : vector<8x32xf32>
    %c0_22 = arith.constant 0 : index
    %c0_23 = arith.constant 0 : index
    %43 = vector.load %arg8[%c0_22, %c0_23] : memref<8x32xf32, #tpu.memory_space<vmem>>, vector<8x32xf32>
    tpu.vector_store %arg8[%c0_22, %c0_23], %42 {strides = array<i32>} : memref<8x32xf32, #tpu.memory_space<vmem>>, vector<8x32xf32>,
    return
  }
  func.func @transform_0(%arg0: i32) -> (i32, i32) {
    %c0_i32 = arith.constant 0 : i32
    %c0_i32_0 = arith.constant 0 : i32
    return %arg0, %c0_i32 : i32, i32
  }
  func.func @transform_1(%arg0: i32) -> (i32, i32) {
    %c0_i32 = arith.constant 0 : i32
    %c0_i32_0 = arith.constant 0 : i32
    %c0_i32_1 = arith.constant 0 : i32
    return %c0_i32, %c0_i32_0 : i32, i32
  }
  func.func @transform_2(%arg0: i32) -> (i32, i32) {
    %c0_i32 = arith.constant 0 : i32
    %c0_i32_0 = arith.constant 0 : i32
    %c0_i32_1 = arith.constant 0 : i32
    return %c0_i32, %c0_i32_0 : i32, i32
  }
  func.func @transform_3(%arg0: i32) -> (i32, i32) {
    %c0_i32 = arith.constant 0 : i32
    %c0_i32_0 = arith.constant 0 : i32
    %c0_i32_1 = arith.constant 0 : i32
    return %c0_i32, %c0_i32_0 : i32, i32
  }
  func.func @transform_4(%arg0: i32) -> (i32, i32) {
    %c0_i32 = arith.constant 0 : i32
    %c0_i32_0 = arith.constant 0 : i32
    %c0_i32_1 = arith.constant 0 : i32
    return %c0_i32, %c0_i32_0 : i32, i32
  }
  func.func @transform_5(%arg0: i32) -> (i32, i32) {
    %c0_i32 = arith.constant 0 : i32
    %c0_i32_0 = arith.constant 0 : i32
    %c0_i32_1 = arith.constant 0 : i32
    return %c0_i32, %c0_i32_0 : i32, i32
  }
  func.func @transform_6(%arg0: i32) -> (i32, i32) {
    %c0_i32 = arith.constant 0 : i32
    %c0_i32_0 = arith.constant 0 : i32
    %c0_i32_1 = arith.constant 0 : i32
    return %c0_i32, %c0_i32_0 : i32, i32
  }
  func.func @transform_7(%arg0: i32) -> (i32, i32) {
    %c0_i32 = arith.constant 0 : i32
    %c0_i32_0 = arith.constant 0 : i32
    return %arg0, %c0_i32 : i32, i32
  }
}

</mosaic_0001>

<bundles_post_ra>
// kernel: tpu_custom_call.1
= control target key start
LH: loop header
LB: loop body
LE: loop exit
PB: predicated region body
PF: predicated region fallthrough
CT: control target
= control target key end

     0   :  { %12 = vsyncpa [#allocation3], 0  ;;  %s878_s0 = inlined_call_operand.vmem [shape: f32[16,32], index: 0, kind: input, shape index: {}]   ;;  %s879_s1 = inlined_call_operand.vmem [shape: f32[1,32], index: 1, kind: input, shape index: {}]   ;;  %s880_s2 = inlined_call_operand.vmem [shape: f32[1,32], index: 2, kind: input, shape index: {}]   ;;  %s881_s3 = inlined_call_operand.vmem [shape: bf16[32,64], index: 3, kind: input, shape index: {}]   ;;  %s882_s4 = inlined_call_operand.vmem [shape: f32[1,64], index: 4, kind: input, shape index: {}]   ;;  %s883_s5 = inlined_call_operand.vmem [shape: bf16[64,32], index: 5, kind: input, shape index: {}]   ;;  %s884_s6 = inlined_call_operand.vmem [shape: f32[1,32], index: 6, kind: input, shape index: {}]   ;;  %s885_s7 = inlined_call_operand.hbm [shape: f32[16,32], index: 7, kind: output, shape index: {}]  }
   0x1   :  { %14 = vsyncpa [#allocation3 + $0x1], 0  ;;  %s744_s24 = smov 0   ;;  %s746_s25 = smov 0  }
   0x2   :  { %s748_s26 = smov 0   ;;  %s750_s27 = smov 0  }
   0x3 LB: > { %s765_s28 = sadd.s32 4294967295, %s699_s27   ;;  %s536_s29 = sadd.s32 4294967294, %s699_s27   ;;  %s699_s27 = sphi %s750_s27, %s891_s27   ;;  %s695_s26 = sphi %s748_s26, %s890_s26   ;;  %s691_s25 = sphi %s746_s25, %s889_s25   ;;  %s687_s24 = sphi %s744_s24, %s888_s24  }
   0x4   : > { %s769_s30 = sadd.s32 1, %s699_s27   ;;  %s179_s8 = sadd.s32 1, %s695_s26 }
   0x5   : > { %s176_s9 = ssub.s32 %s699_s27, %s769_s30  ;;  %p189_p0 = scmp.ne.s32.totalorder %s695_s26, %s691_s25 }
   0x6   : > { %p177_p1 = scmp.eq.s32.totalorder %s176_s9, 0  ;;  %p190_p2 = scmp.eq.s32.totalorder %s765_s28, 1 }
   0x7   : > { %p195_p3 = scmp.ne.s32.totalorder %s691_s25, %s687_s24  ;;  %p196_p4 = scmp.eq.s32.totalorder %s536_s29, 1 }
   0x8   : > { %s780_s10 = scalar_select %p177_p1, %s695_s26, %s179_s8  }
   0x9   : > { %p782_p5 = por %p190_p2, %p189_p0  ;;  %p786_p6 = por %p196_p4, %p195_p3 }
   0xa   : > { %p539_p7 = scmp.ge.s32.totalorder %s699_s27, 1  ;;  %p239_p8 = scmp.lt.s32.totalorder %s699_s27, 3 }
   0xc   : > { %p240_p9 = pnand %p539_p7, %p239_p8 }
   0xd   : > { %p270_p10 = scmp.lt.s32.totalorder (!%p240_p9), %s765_s28, 1  ;;  %vm276_vm0 = vcmask (!%p240_p9), 261120   ;;  %v627_v7 = vld [vmem:[%s881_s3] sm:$0xff] (!%p240_p9)   ;;  %v701_v8 = vmov (!%p240_p9), 0.0   ;;  %v628_v9 = vld [vmem:[%s881_s3 + $0x8] sm:$0xff] (!%p240_p9)   ;;  %vm702_vm1 = vmmov (!%p240_p9), 0  }
   0xe   : > { %243 = sbr.rel (%p240_p9) target bundleno = 802 (0x322), region = 48  ;;  %566 = vmatprep.subr.bf16.mxu0 (!%p240_p9), %v701_v8  ;;  %574 = vmatprep.subr.bf16.mxu1 (!%p240_p9), %v701_v8  ;;  %v542_v14 = vld [vmem:[%s879_s1] ss:$0 sm:$0xff] (!%p240_p9)  ;;  %v630_v21 = vld [vmem:[%s883_s5 + $0x8] sm:$0xff] (!%p240_p9)   ;;  %v631_v22 = vld [vmem:[%s883_s5 + $0x10] sm:$0xff] (!%p240_p9)   ;;  %vm418_vm2 = vcmask (!%p240_p9), 523264  }
   0xf   : > { %567 = vmatpush3.bf16.msra.mxu0 (!%p240_p9), %v627_v7  ;;  %570 = vmatprep.mubr.msk.bf16.mxu0 (!%p240_p9), %vm702_vm1, %v701_v8  ;;  %v543_v16 = vld [vmem:[%s880_s2] ss:$0 sm:$0xff] (!%p240_p9)  ;;  %v632_v23 = vld [vmem:[%s883_s5 + $0x18] sm:$0xff] (!%p240_p9)   ;;  %s267_s22 = sand.u32 (!%p240_p9), 1, %s691_s25   ;;  %s555_s9 = sshll.u32 (!%p240_p9), %s765_s28, 7 }
  0x10   : > { %568 = vmatprep.subr.bf16.mxu0 (!%p240_p9), %v701_v8  ;;  %582 = vmatprep.mubr.msk.bf16.mxu1 (!%p240_p9), %vm702_vm1, %v701_v8  ;;  %v629_v20 = vld [vmem:[%s883_s5] sm:$0xff] (!%p240_p9)   ;;  %s540_s23 = sshll.u32 (!%p240_p9), %s267_s22, 3  ;;  %s703_s19 = smov (!%p240_p9), [#allocation2]  }
  0x11   : > { %575 = vmatpush3.bf16.msra.mxu1 (!%p240_p9), %v629_v20  ;;  %v544_v24 = vld [vmem:[%s882_s4] ss:$0 sm:$0xff] (!%p240_p9)  ;;  %s641_s20 = sshll.u32 (!%p240_p9), %s703_s19, 4  ;;  %s642_s20 = int_to_ptr.vmem [resolvable:$false] %s641_s20 }
  0x12   : > { %576 = vmatprep.subr.bf16.mxu1 (!%p240_p9), %v701_v8  ;;  %v548_v36 = vld [vmem:[%s884_s6] ss:$0 sm:$0xff] (!%p240_p9)  ;;  %s643_s21 = scalar_lea.vmem (!%p240_p9), %s642_s20, 256 }
  0x13   : > { %569 = vmatpush3.bf16.msra.mxu0 (!%p240_p9), %v628_v9 }
  0x15   : > { %s271_s13 = scalar_select %p270_p10, %s765_s28, 1  ;;  %577 = vmatpush3.bf16.msra.mxu1 %v630_v21 }
  0x16   : > { %578 = vmatprep.subr.bf16.mxu1 %v701_v8  ;;  %s464_s28 = scalar_lea.sflag [#allocation3], %s267_s22 }
  0x17   : > { %s541_s14 = sshll.u32 %s271_s13, 3  ;;  %s269_s13 = scalar_lea.vmem [#allocation2], %s540_s23 }
  0x18   : > { %s273_s17 = scalar_lea.vmem %s878_s0, %s541_s14  ;;  %s477_s14 = sshll.u32 %s269_s13, 4  ;;  %s837_s14 = int_to_ptr.vmem [resolvable:$true] %s477_s14 }
  0x19   : > { %v275_v0 = vld [vmem:[%s273_s17] sm:$0xff]  ;;  %579 = vmatpush3.bf16.msra.mxu1 %v631_v22  ;;  %s835_s17 = scalar_lea.hbm %s885_s7, %s555_s9  ;;  %s637_s18 = scalar_lea.vmem %s837_s14, 128 }
  0x1a   : > { %v277_v1 = vsel %vm276_vm0, %v275_v0, 0.0  ;;  %580 = vmatprep.subr.bf16.mxu1 %v701_v8  ;;  %p638_p11 = scmp.ne.s32.totalorder %s837_s14, %s637_s18  ;;  %p644_p0 = scmp.lt.s32.totalorder %s837_s14, %s642_s20 }
  0x1b   : > { %278 = vadd.xlane.f32.xlu0 %v277_v1  ;;  %p645_p1 = scmp.lt.s32.totalorder %s643_s21, %s637_s18 }
  0x1c   : > { %p639_p12 = pnand %p638_p11, %p782_p5 }
  0x1d   : > { %581 = vmatpush3.bf16.msra.mxu1 %v632_v23  ;;  %p646_p2 = por %p645_p1, %p644_p0 }
  0x1e   : > { %p640_p13 = pneg %p639_p12 }
  0x20   : > { %p647_p3 = pnand %p646_p2, %p640_p13 }
  0xa8   : > { %v279_v2 = vpop.xlane.xlu0 %278 }
  0xa9   : > { %v280_v3 = vmul.f32 0.03125, %v279_v2 }
  0xab   : > { %v281_v4 = vsub.f32 %v275_v0, %v280_v3 }
  0xad   : > { %v282_v5 = vmul.f32 %v281_v4, %v281_v4 }
  0xaf   : > { %v283_v6 = vsel %vm276_vm0, %v282_v5, 0.0 }
  0xb0   : > { %284 = vadd.xlane.f32.xlu0 %v283_v6 }
 0x13d   : > { %v285_v10 = vpop.xlane.xlu0 %284 }
 0x13e   : > { %v286_v11 = vmul.f32 0.03125, %v285_v10 }
 0x140   : > { %v287_v12 = vadd.f32 1e-05, %v286_v11 }
 0x142   : > { %633 = vrsqrt.f32 %v287_v12 }
 0x14c   : > { %v634_v13 = vpop.eup %633 }
 0x14d   : > { %v289_v15 = vmul.f32 %v634_v13, %v281_v4 }
 0x14f   : > { %v297_v17 = vmul.f32 %v542_v14, %v289_v15 }
 0x151   : > { %v305_v18 = vadd.f32 %v543_v16, %v297_v17 }
 0x153   : > { %v306_v19 = vpack.c.bf16 %v305_v18, %v305_v18 }
 0x155   : > { %571 = vmatmul.mubr.msk.bf16.vlgmr.msra.gmra.mrb[0].mxu0 %vm276_vm0, %v306_v19 }
 0x228   : > { %v367_v25 = vpop.f32.mrb[0].mxu0 }
 0x229   : > { %v368_v26 = vadd.f32 %v544_v24, %v367_v25  ;;  %v572_v27 = vpop.f32.mrb[1].mxu0 }
 0x22a   : > { %v370_v28 = vpop.f32.mrb[2].mxu0 }
 0x22b   : > { %v374_v29 = vmul.f32 0.70710677, %v368_v26  ;;  %v573_v30 = vpop.f32.mrb[3].mxu0  ;;  %v373_v32 = vmul.f32 0.5, %v368_v26 }
 0x22d   : > { %635 = verf.f32 %v374_v29 }
 0x237   : > { %v636_v31 = vpop.eup %635 }
 0x238   : > { %v376_v33 = vadd.f32 1.0, %v636_v31 }
 0x23a   : > { %v377_v34 = vmul.f32 %v376_v33, %v373_v32 }
 0x23c   : > { %v378_v35 = vpack.c.bf16 %v377_v34, %v377_v34 }
 0x23e   : > { %583 = vmatmul.mubr.msk.bf16.vlgmr.msra.gmra.mrb[0].mxu1 %vm418_vm2, %v378_v35 }
 0x311   : > { %v456_v37 = vpop.f32.mrb[0].mxu1 }
 0x312   : > { %v457_v38 = vadd.f32 %v548_v36, %v456_v37  ;;  %v584_v39 = vpop.f32.mrb[1].mxu1 }
 0x313   : > { %v459_v40 = vpop.f32.mrb[2].mxu1 }
 0x314   : > { %v585_v41 = vpop.f32.mrb[3].mxu1  ;;  %462 = vst.msk [vmem:[%s269_s13] sm:$0xff] %vm276_vm0, %v457_v38 }
 0x315   : > { %650 = shalt.err (!%p647_p3)
}
 0x316   : > { %s651_s22 = scalar_lea.hbm %s835_s17, 128  ;;  %s655_s8 = scalar_lea.hbm %s885_s7, 256 }
 0x317   : > { %p652_p4 = scmp.ne.s32.totalorder %s835_s17, %s651_s22  ;;  %p656_p9 = scmp.lt.u32.totalorder %s835_s17, %s885_s7 }
 0x318   : > { %p657_p10 = scmp.lt.u32.totalorder %s655_s8, %s651_s22  ;;  %p659_p12 = scmp.lt.u32.totalorder %s651_s22, %s835_s17 }
 0x319   : > { %p653_p7 = pnand %p652_p4, %p782_p5 }
 0x31a   : > { %p658_p11 = por %p657_p10, %p656_p9 }
 0x31b   : > { %p654_p8 = pneg %p653_p7 }
 0x31c   : > { %p660_p13 = por %p659_p12, %p658_p11 }
 0x31e   : > { %p661_p0 = pnand %p660_p13, %p654_p8 }
 0x320   : > { %664 = shalt.err (!%p661_p0)
}
 0x321   : > { %586 = dma.vmem_to_hbm [thread:$0]  (%p782_p5), %s837_s14, 128, %s835_s17, %s464_s28  }
 0x322 PF: > { %p592_p1 = scmp.ge.s32.totalorder %s699_s27, 2  ;;  %s489_s15 = sand.u32 1, %s687_s24  }
 0x323   : > { %s490_s16 = scalar_lea.sflag [#allocation3], %s489_s15 }
 0x324   : > { %p589_p2 = pnand %p592_p1, %p786_p6 }
 0x326   : > { %682 = dma.done.wait (!%p589_p2), %s490_s16, 128  }
 0x327   : > { %684 = vsyncadd (!%p589_p2), %s490_s16, 4294967168  ;;  %p17_p3 = scmp.ge.s32.totalorder %s769_s30, 4   ;;  %s888_s24 = smov %s691_s25 }
 0x328   : > { %s889_s25 = smov %s695_s26  ;;  %s890_s26 = smov %s780_s10 }
 0x329   : > { %s891_s27 = smov %s769_s30  ;;  %19 = sbr.rel (!%p17_p3) target bundleno = 3 (0x3), region = 83 }
 0x330   :  { %495 = vsyncpa [#allocation3], 1 }
 0x331   :  { %497 = vsyncpa [#allocation3 + $0x1], 1 }

// kernel: tpu_custom_call.1
= control target key start
LH: loop header
LB: loop body
LE: loop exit
PB: predicated region body
PF: predicated region fallthrough
CT: control target
= control target key end

     0   :  { %12 = vsyncpa [#allocation3], 0  ;;  %s878_s0 = inlined_call_operand.vmem [shape: f32[16,32], index: 0, kind: input, shape index: {}]   ;;  %s879_s1 = inlined_call_operand.vmem [shape: f32[1,32], index: 1, kind: input, shape index: {}]   ;;  %s880_s2 = inlined_call_operand.vmem [shape: f32[1,32], index: 2, kind: input, shape index: {}]   ;;  %s881_s3 = inlined_call_operand.vmem [shape: bf16[32,64], index: 3, kind: input, shape index: {}]   ;;  %s882_s4 = inlined_call_operand.vmem [shape: f32[1,64], index: 4, kind: input, shape index: {}]   ;;  %s883_s5 = inlined_call_operand.vmem [shape: bf16[64,32], index: 5, kind: input, shape index: {}]   ;;  %s884_s6 = inlined_call_operand.vmem [shape: f32[1,32], index: 6, kind: input, shape index: {}]   ;;  %s885_s7 = inlined_call_operand.hbm [shape: f32[16,32], index: 7, kind: output, shape index: {}]  }
   0x1   :  { %14 = vsyncpa [#allocation3 + $0x1], 0  ;;  %s744_s24 = smov 0   ;;  %s746_s25 = smov 0  }
   0x2   :  { %s748_s26 = smov 0   ;;  %s750_s27 = smov 0  }
   0x3 LB: > { %s765_s28 = sadd.s32 4294967295, %s699_s27   ;;  %s536_s29 = sadd.s32 4294967294, %s699_s27   ;;  %s699_s27 = sphi %s750_s27, %s891_s27   ;;  %s695_s26 = sphi %s748_s26, %s890_s26   ;;  %s691_s25 = sphi %s746_s25, %s889_s25   ;;  %s687_s24 = sphi %s744_s24, %s888_s24  }
   0x4   : > { %s769_s30 = sadd.s32 1, %s699_s27   ;;  %s179_s8 = sadd.s32 1, %s695_s26 }
   0x5   : > { %s176_s9 = ssub.s32 %s699_s27, %s769_s30  ;;  %p189_p0 = scmp.ne.s32.totalorder %s695_s26, %s691_s25 }
   0x6   : > { %p177_p1 = scmp.eq.s32.totalorder %s176_s9, 0  ;;  %p190_p2 = scmp.eq.s32.totalorder %s765_s28, 1 }
   0x7   : > { %p195_p3 = scmp.ne.s32.totalorder %s691_s25, %s687_s24  ;;  %p196_p4 = scmp.eq.s32.totalorder %s536_s29, 1 }
   0x8   : > { %s780_s10 = scalar_select %p177_p1, %s695_s26, %s179_s8  }
   0x9   : > { %p782_p5 = por %p190_p2, %p189_p0  ;;  %p786_p6 = por %p196_p4, %p195_p3 }
   0xa   : > { %p539_p7 = scmp.ge.s32.totalorder %s699_s27, 1  ;;  %p239_p8 = scmp.lt.s32.totalorder %s699_s27, 3 }
   0xc   : > { %p240_p9 = pnand %p539_p7, %p239_p8 }
   0xd   : > { %p270_p10 = scmp.lt.s32.totalorder (!%p240_p9), %s765_s28, 1  ;;  %vm276_vm0 = vcmask (!%p240_p9), 261120   ;;  %v627_v7 = vld [vmem:[%s881_s3] sm:$0xff] (!%p240_p9)   ;;  %v701_v8 = vmov (!%p240_p9), 0.0   ;;  %v628_v9 = vld [vmem:[%s881_s3 + $0x8] sm:$0xff] (!%p240_p9)   ;;  %vm702_vm1 = vmmov (!%p240_p9), 0  }
   0xe   : > { %243 = sbr.rel (%p240_p9) target bundleno = 802 (0x322), region = 48  ;;  %566 = vmatprep.subr.bf16.mxu0 (!%p240_p9), %v701_v8  ;;  %574 = vmatprep.subr.bf16.mxu1 (!%p240_p9), %v701_v8  ;;  %v542_v14 = vld [vmem:[%s879_s1] ss:$0 sm:$0xff] (!%p240_p9)  ;;  %v630_v21 = vld [vmem:[%s883_s5 + $0x8] sm:$0xff] (!%p240_p9)   ;;  %v631_v22 = vld [vmem:[%s883_s5 + $0x10] sm:$0xff] (!%p240_p9)   ;;  %vm418_vm2 = vcmask (!%p240_p9), 523264  }
   0xf   : > { %567 = vmatpush3.bf16.msra.mxu0 (!%p240_p9), %v627_v7  ;;  %570 = vmatprep.mubr.msk.bf16.mxu0 (!%p240_p9), %vm702_vm1, %v701_v8  ;;  %v543_v16 = vld [vmem:[%s880_s2] ss:$0 sm:$0xff] (!%p240_p9)  ;;  %v632_v23 = vld [vmem:[%s883_s5 + $0x18] sm:$0xff] (!%p240_p9)   ;;  %s267_s22 = sand.u32 (!%p240_p9), 1, %s691_s25   ;;  %s555_s9 = sshll.u32 (!%p240_p9), %s765_s28, 7 }
  0x10   : > { %568 = vmatprep.subr.bf16.mxu0 (!%p240_p9), %v701_v8  ;;  %582 = vmatprep.mubr.msk.bf16.mxu1 (!%p240_p9), %vm702_vm1, %v701_v8  ;;  %v629_v20 = vld [vmem:[%s883_s5] sm:$0xff] (!%p240_p9)   ;;  %s540_s23 = sshll.u32 (!%p240_p9), %s267_s22, 3  ;;  %s703_s19 = smov (!%p240_p9), [#allocation2]  }
  0x11   : > { %575 = vmatpush3.bf16.msra.mxu1 (!%p240_p9), %v629_v20  ;;  %v544_v24 = vld [vmem:[%s882_s4] ss:$0 sm:$0xff] (!%p240_p9)  ;;  %s641_s20 = sshll.u32 (!%p240_p9), %s703_s19, 4  ;;  %s642_s20 = int_to_ptr.vmem [resolvable:$false] %s641_s20 }
  0x12   : > { %576 = vmatprep.subr.bf16.mxu1 (!%p240_p9), %v701_v8  ;;  %v548_v36 = vld [vmem:[%s884_s6] ss:$0 sm:$0xff] (!%p240_p9)  ;;  %s643_s21 = scalar_lea.vmem (!%p240_p9), %s642_s20, 256 }
  0x13   : > { %569 = vmatpush3.bf16.msra.mxu0 (!%p240_p9), %v628_v9 }
  0x15   : > { %s271_s13 = scalar_select %p270_p10, %s765_s28, 1  ;;  %577 = vmatpush3.bf16.msra.mxu1 %v630_v21 }
  0x16   : > { %578 = vmatprep.subr.bf16.mxu1 %v701_v8  ;;  %s464_s28 = scalar_lea.sflag [#allocation3], %s267_s22 }
  0x17   : > { %s541_s14 = sshll.u32 %s271_s13, 3  ;;  %s269_s13 = scalar_lea.vmem [#allocation2], %s540_s23 }
  0x18   : > { %s273_s17 = scalar_lea.vmem %s878_s0, %s541_s14  ;;  %s477_s14 = sshll.u32 %s269_s13, 4  ;;  %s837_s14 = int_to_ptr.vmem [resolvable:$true] %s477_s14 }
  0x19   : > { %v275_v0 = vld [vmem:[%s273_s17] sm:$0xff]  ;;  %579 = vmatpush3.bf16.msra.mxu1 %v631_v22  ;;  %s835_s17 = scalar_lea.hbm %s885_s7, %s555_s9  ;;  %s637_s18 = scalar_lea.vmem %s837_s14, 128 }
  0x1a   : > { %v277_v1 = vsel %vm276_vm0, %v275_v0, 0.0  ;;  %580 = vmatprep.subr.bf16.mxu1 %v701_v8  ;;  %p638_p11 = scmp.ne.s32.totalorder %s837_s14, %s637_s18  ;;  %p644_p0 = scmp.lt.s32.totalorder %s837_s14, %s642_s20 }
  0x1b   : > { %278 = vadd.xlane.f32.xlu0 %v277_v1  ;;  %p645_p1 = scmp.lt.s32.totalorder %s643_s21, %s637_s18 }
  0x1c   : > { %p639_p12 = pnand %p638_p11, %p782_p5 }
  0x1d   : > { %581 = vmatpush3.bf16.msra.mxu1 %v632_v23  ;;  %p646_p2 = por %p645_p1, %p644_p0 }
  0x1e   : > { %p640_p13 = pneg %p639_p12 }
  0x20   : > { %p647_p3 = pnand %p646_p2, %p640_p13 }
  0xa8   : > { %v279_v2 = vpop.xlane.xlu0 %278 }
  0xa9   : > { %v280_v3 = vmul.f32 0.03125, %v279_v2 }
  0xab   : > { %v281_v4 = vsub.f32 %v275_v0, %v280_v3 }
  0xad   : > { %v282_v5 = vmul.f32 %v281_v4, %v281_v4 }
  0xaf   : > { %v283_v6 = vsel %vm276_vm0, %v282_v5, 0.0 }
  0xb0   : > { %284 = vadd.xlane.f32.xlu0 %v283_v6 }
 0x13d   : > { %v285_v10 = vpop.xlane.xlu0 %284 }
 0x13e   : > { %v286_v11 = vmul.f32 0.03125, %v285_v10 }
 0x140   : > { %v287_v12 = vadd.f32 1e-05, %v286_v11 }
 0x142   : > { %633 = vrsqrt.f32 %v287_v12 }
 0x14c   : > { %v634_v13 = vpop.eup %633 }
 0x14d   : > { %v289_v15 = vmul.f32 %v634_v13, %v281_v4 }
 0x14f   : > { %v297_v17 = vmul.f32 %v542_v14, %v289_v15 }
 0x151   : > { %v305_v18 = vadd.f32 %v543_v16, %v297_v17 }
 0x153   : > { %v306_v19 = vpack.c.bf16 %v305_v18, %v305_v18 }
 0x155   : > { %571 = vmatmul.mubr.msk.bf16.vlgmr.msra.gmra.mrb[0].mxu0 %vm276_vm0, %v306_v19 }
 0x228   : > { %v367_v25 = vpop.f32.mrb[0].mxu0 }
 0x229   : > { %v368_v26 = vadd.f32 %v544_v24, %v367_v25  ;;  %v572_v27 = vpop.f32.mrb[1].mxu0 }
 0x22a   : > { %v370_v28 = vpop.f32.mrb[2].mxu0 }
 0x22b   : > { %v374_v29 = vmul.f32 0.70710677, %v368_v26  ;;  %v573_v30 = vpop.f32.mrb[3].mxu0  ;;  %v373_v32 = vmul.f32 0.5, %v368_v26 }
 0x22d   : > { %635 = verf.f32 %v374_v29 }
 0x237   : > { %v636_v31 = vpop.eup %635 }
 0x238   : > { %v376_v33 = vadd.f32 1.0, %v636_v31 }
 0x23a   : > { %v377_v34 = vmul.f32 %v376_v33, %v373_v32 }
 0x23c   : > { %v378_v35 = vpack.c.bf16 %v377_v34, %v377_v34 }
 0x23e   : > { %583 = vmatmul.mubr.msk.bf16.vlgmr.msra.gmra.mrb[0].mxu1 %vm418_vm2, %v378_v35 }
 0x311   : > { %v456_v37 = vpop.f32.mrb[0].mxu1 }
 0x312   : > { %v457_v38 = vadd.f32 %v548_v36, %v456_v37  ;;  %v584_v39 = vpop.f32.mrb[1].mxu1 }
 0x313   : > { %v459_v40 = vpop.f32.mrb[2].mxu1 }
 0x314   : > { %v585_v41 = vpop.f32.mrb[3].mxu1  ;;  %462 = vst.msk [vmem:[%s269_s13] sm:$0xff] %vm276_vm0, %v457_v38 }
 0x315   : > { %650 = shalt.err (!%p647_p3)
}
 0x316   : > { %s651_s22 = scalar_lea.hbm %s835_s17, 128  ;;  %s655_s8 = scalar_lea.hbm %s885_s7, 256 }
 0x317   : > { %p652_p4 = scmp.ne.s32.totalorder %s835_s17, %s651_s22  ;;  %p656_p9 = scmp.lt.u32.totalorder %s835_s17, %s885_s7 }
 0x318   : > { %p657_p10 = scmp.lt.u32.totalorder %s655_s8, %s651_s22  ;;  %p659_p12 = scmp.lt.u32.totalorder %s651_s22, %s835_s17 }
 0x319   : > { %p653_p7 = pnand %p652_p4, %p782_p5 }
 0x31a   : > { %p658_p11 = por %p657_p10, %p656_p9 }
 0x31b   : > { %p654_p8 = pneg %p653_p7 }
 0x31c   : > { %p660_p13 = por %p659_p12, %p658_p11 }
 0x31e   : > { %p661_p0 = pnand %p660_p13, %p654_p8 }
 0x320   : > { %664 = shalt.err (!%p661_p0)
}
 0x321   : > { %586 = dma.vmem_to_hbm [thread:$0]  (%p782_p5), %s837_s14, 128, %s835_s17, %s464_s28  }
 0x322 PF: > { %p592_p1 = scmp.ge.s32.totalorder %s699_s27, 2  ;;  %s489_s15 = sand.u32 1, %s687_s24  }
 0x323   : > { %s490_s16 = scalar_lea.sflag [#allocation3], %s489_s15 }
 0x324   : > { %p589_p2 = pnand %p592_p1, %p786_p6 }
 0x326   : > { %682 = dma.done.wait (!%p589_p2), %s490_s16, 128  }
 0x327   : > { %684 = vsyncadd (!%p589_p2), %s490_s16, 4294967168  ;;  %p17_p3 = scmp.ge.s32.totalorder %s769_s30, 4   ;;  %s888_s24 = smov %s691_s25 }
 0x328   : > { %s889_s25 = smov %s695_s26  ;;  %s890_s26 = smov %s780_s10 }
 0x329   : > { %s891_s27 = smov %s769_s30  ;;  %19 = sbr.rel (!%p17_p3) target bundleno = 3 (0x3), region = 83 }
 0x330   :  { %495 = vsyncpa [#allocation3], 1 }
 0x331   :  { %497 = vsyncpa [#allocation3 + $0x1], 1 }

</bundles_post_ra>
